<compile_context>
chip_gen: v6e
topology: v6e:2x2x1
jax: 0.10.0
libtpu: 0.0.40
codegen_flags: <defaults>
</compile_context>

<pallas_src>
import functools

import jax
import jax.numpy as jnp
from jax import lax
from jax.experimental import pallas as pl
from jax.experimental.pallas import tpu as pltpu

SMOOTH = 1e-4


# ----------------------------------------------------------------------------
# Kernels
# ----------------------------------------------------------------------------
def _dice_kernel_cs(x_ref, t_ref, m_ref, sp_out, sy_out, i_out,
                    sp_acc, sy_acc, i_acc, *, chunk, alpha, with_logits):
    """Classes on SUBLANES, samples lane-dense.  x_ref: (C, TILE)."""
    step = pl.program_id(1)

    @pl.when(step == 0)
    def _():
        sp_acc[...] = jnp.zeros_like(sp_acc)
        sy_acc[...] = jnp.zeros_like(sy_acc)
        i_acc[...] = jnp.zeros_like(i_acc)

    tile = x_ref.shape[1]
    n_chunks = tile // chunk
    n_fold = chunk // 128

    def lane_fold(v):                       # (C, chunk) -> (C, 128), VPU adds
        acc = v[:, 0:128]
        for k in range(1, n_fold):
            acc = acc + v[:, k * 128:(k + 1) * 128]
        return acc

    def body(j, carry):
        start = pl.multiple_of(j * chunk, chunk)
        x = x_ref[:, pl.ds(start, chunk)].astype(jnp.float32)       # (C, chunk)
        if with_logits:
            mx = jnp.max(x, axis=0, keepdims=True)                  # (1, chunk)
            e = jnp.exp(x - mx)
            s = jnp.sum(e, axis=0, keepdims=True)
            p = e * (1.0 / s)          # one divide/sample + C muls (not C divs)
        else:
            p = x
        msk = m_ref[:, pl.ds(start, chunk)].astype(jnp.float32)     # (1, chunk)
        tgt = t_ref[:, pl.ds(start, chunk)]                         # (1, chunk)
        cls = lax.broadcasted_iota(jnp.int32, p.shape, 0)
        y = jnp.where(cls == tgt, msk, 0.0)                         # one_hot*mask
        p = p * msk                                                 # mask first
        if alpha:                                                   # static
            p = ((1.0 - p) ** alpha) * p
        # Small (C,128) RMW per chunk instead of a full-tile accumulator.
        sp_acc[...] += lane_fold(p)
        sy_acc[...] += lane_fold(y)
        i_acc[...] += lane_fold(p * y)     # keep the mul: exact for any mask
        return carry

    unroll = True if n_chunks <= 8 else 4
    lax.fori_loop(0, n_chunks, body, 0, unroll=unroll)

    @pl.when(step == pl.num_programs(1) - 1)
    def _():
        sp_out[...] = jnp.sum(sp_acc[...], axis=1, keepdims=True)[None]   # (1,C,1)
        sy_out[...] = jnp.sum(sy_acc[...], axis=1, keepdims=True)[None]
        i_out[...] = jnp.sum(i_acc[...], axis=1, keepdims=True)[None]


def _dice_kernel_cl(x_ref, t_ref, m_ref, sp_out, sy_out, i_out,
                    sp_acc, sy_acc, i_acc, *, chunk, alpha, with_logits):
    """Classes on LANES (natural (N, C) layout; no wrapper transpose)."""
    step = pl.program_id(1)

    @pl.when(step == 0)
    def _():
        sp_acc[...] = jnp.zeros_like(sp_acc)
        sy_acc[...] = jnp.zeros_like(sy_acc)
        i_acc[...] = jnp.zeros_like(i_acc)

    tile = x_ref.shape[0]
    n_chunks = tile // chunk
    n_fold = chunk // 8

    def sub_fold(v):                        # (chunk, C) -> (8, C), VPU adds
        acc = v[0:8, :]
        for k in range(1, n_fold):
            acc = acc + v[k * 8:(k + 1) * 8, :]
        return acc

    def body(j, carry):
        start = pl.multiple_of(j * chunk, chunk)
        x = x_ref[pl.ds(start, chunk), :].astype(jnp.float32)       # (chunk, C)
        if with_logits:
            mx = jnp.max(x, axis=1, keepdims=True)
            e = jnp.exp(x - mx)
            s = jnp.sum(e, axis=1, keepdims=True)
            p = e * (1.0 / s)
        else:
            p = x
        msk = m_ref[pl.ds(start, chunk), :].astype(jnp.float32)     # (chunk, 1)
        tgt = t_ref[pl.ds(start, chunk), :]                         # (chunk, 1)
        cls = lax.broadcasted_iota(jnp.int32, p.shape, 1)
        y = jnp.where(cls == tgt, msk, 0.0)
        p = p * msk
        if alpha:
            p = ((1.0 - p) ** alpha) * p
        sp_acc[...] += sub_fold(p)
        sy_acc[...] += sub_fold(y)
        i_acc[...] += sub_fold(p * y)
        return carry

    unroll = True if n_chunks <= 8 else 4
    lax.fori_loop(0, n_chunks, body, 0, unroll=unroll)

    @pl.when(step == pl.num_programs(1) - 1)
    def _():
        sp_out[...] = jnp.sum(sp_acc[...], axis=0, keepdims=True)[None]   # (1,1,C)
        sy_out[...] = jnp.sum(sy_acc[...], axis=0, keepdims=True)[None]
        i_out[...] = jnp.sum(i_acc[...], axis=0, keepdims=True)[None]


# ----------------------------------------------------------------------------
# Tiling plan (C-, dtype- and layout-aware)
# ----------------------------------------------------------------------------
def _round_up(x, m):
    return (x + m - 1) // m * m


def _plan(n, c, itemsize, natural, *, chunk_override=None, max_tile_override=None,
          buffer_budget_bytes=6 * 1024 * 1024):
    """Return (tile, chunk, n_pad, n_split)."""
    if natural:
        c_lane = _round_up(c, 128)
        # rows per inner chunk so ~4 f32 temporaries stay inside the vreg file
        chunk = max(8, min(256, ((8192 // c_lane) // 8) * 8))
        per_elem = 2 * (c_lane * itemsize + 2 * 128 * 4)   # dbl-buffered B / row
        hard_cap = 4096
    else:
        c_sub = _round_up(c, 8)
        chunk = max(128, min(512, ((4096 // c_sub) // 128) * 128))
        per_elem = 2 * (c_sub * itemsize + 2 * 8 * 4)      # dbl-buffered B / sample
        hard_cap = 8192
    if chunk_override is not None:
        chunk = chunk_override
    max_tile = max(chunk, min(hard_cap,
                              (buffer_budget_bytes // per_elem) // chunk * chunk))
    if max_tile_override is not None:
        max_tile = max(chunk, (max_tile_override // chunk) * chunk)

    if n <= max_tile:
        tile = _round_up(max(n, 1), chunk)
        return tile, chunk, tile, 1
    n_split = 2                                   # feed both TensorCores on v7x
    per_split = -(-n // n_split)
    tile = min(max_tile, _round_up(per_split, chunk))
    tiles_per_split = -(-per_split // tile)
    n_pad = n_split * tiles_per_split * tile
    return tile, chunk, n_pad, n_split


# ----------------------------------------------------------------------------
# Wrapper
# ----------------------------------------------------------------------------
def dice_loss(logits, target, mask=None, *, smooth=SMOOTH, alpha=0.0,
              with_logits=True, square_denominator=False, ohem_ratio=0.0,
              reduction="mean", index_label_position=True,
              chunk_override=None, max_tile_override=None):
    """Multi-class DiceLoss forward.

    logits: [N, C] float (any float dtype); target: [N] int; mask: [N] {0,1} or None.
    """
    # TODO(synk): square_denominator=True, ohem_ratio>0 (data-dependent sort /
    # top-k OHEM), the binary C==1 sigmoid path, index_label_position=False and
    # reduction='none' are not implemented in the Pallas kernels.
    assert not square_denominator and ohem_ratio == 0.0 and index_label_position
    assert reduction in ("mean", "sum")

    n, c = logits.shape
    assert c > 1, "binary path (C==1) not implemented"

    # Keep alpha an integer when possible -> integer_pow instead of exp/log.
    if float(alpha).is_integer():
        alpha = int(alpha)

    natural = c >= 64          # classes already (near) lane-dense: skip transpose
    itemsize = jnp.dtype(logits.dtype).itemsize
    tile, chunk, n_pad, n_split = _plan(
        n, c, itemsize, natural,
        chunk_override=chunk_override, max_tile_override=max_tile_override)
    ntc = n_pad // (n_split * tile)               # N-tiles per parallel split
    pad = n_pad - n

    tgt_i32 = target.astype(jnp.int32)
    m1 = (jnp.ones((n,), jnp.float32) if mask is None
          else mask.astype(jnp.float32).reshape(n))

    if natural:
        x_in = jnp.pad(logits, ((0, pad), (0, 0)))                   # (Npad, C)
        t_in = jnp.pad(tgt_i32, (0, pad)).reshape(n_pad, 1)
        m_in = jnp.pad(m1, (0, pad)).reshape(n_pad, 1)               # pads masked
        x_spec = pl.BlockSpec((tile, c), lambda p, i: (p * ntc + i, 0))
        s_spec = pl.BlockSpec((tile, 1), lambda p, i: (p * ntc + i, 0))
        out_block = (1, 1, c)
        out_shape3 = (n_split, 1, c)
        scratch = [pltpu.VMEM((8, c), jnp.float32)] * 3
        kernel = functools.partial(_dice_kernel_cl, chunk=chunk, alpha=alpha,
                                   with_logits=with_logits)
    else:
        # Lane-dense layout for small C: samples on lanes, classes on sublanes.
        x_in = jnp.pad(jnp.transpose(logits), ((0, 0), (0, pad)))    # (C, Npad)
        t_in = jnp.pad(tgt_i32, (0, pad)).reshape(1, n_pad)
        m_in = jnp.pad(m1, (0, pad)).reshape(1, n_pad)
        x_spec = pl.BlockSpec((c, tile), lambda p, i: (0, p * ntc + i))
        s_spec = pl.BlockSpec((1, tile), lambda p, i: (0, p * ntc + i))
        out_block = (1, c, 1)
        out_shape3 = (n_split, c, 1)
        scratch = [pltpu.VMEM((c, 128), jnp.float32)] * 3
        kernel = functools.partial(_dice_kernel_cs, chunk=chunk, alpha=alpha,
                                   with_logits=with_logits)

    out_spec = pl.BlockSpec(out_block, lambda p, i: (p, 0, 0))
    out_sds = jax.ShapeDtypeStruct(out_shape3, jnp.float32)

    sp, sy, inter = pl.pallas_call(
        kernel,
        out_shape=(out_sds, out_sds, out_sds),
        grid_spec=pltpu.PrefetchScalarGridSpec(
            num_scalar_prefetch=0,
            grid=(n_split, ntc),
            in_specs=[x_spec, s_spec, s_spec],
            out_specs=(out_spec, out_spec, out_spec),
            scratch_shapes=scratch,
        ),
        compiler_params=pltpu.CompilerParams(
            dimension_semantics=("parallel", "arbitrary"),
            vmem_limit_bytes=32 * 1024 * 1024),
    )(x_in, t_in, m_in)

    # Tiny final combine in JAX (also merges per-core partials).
    sp = sp.reshape(n_split, c).sum(axis=0)
    sy = sy.reshape(n_split, c).sum(axis=0)
    inter = inter.reshape(n_split, c).sum(axis=0)
    total = jnp.sum((2.0 * inter + n * float(smooth)) / (sp + sy + float(smooth)))
    loss_mean = jnp.float32(c) - total / jnp.float32(n)
    return loss_mean * n if reduction == "sum" else loss_mean


# ----------------------------------------------------------------------------
# Pure-JAX reference (mirrors the PyTorch module, default config)
# ----------------------------------------------------------------------------
def _dice_loss_ref(logits, target, mask=None, *, smooth=SMOOTH, alpha=0.0,
                   with_logits=True):
    n, c = logits.shape
    x = logits.astype(jnp.float32)
    p = jax.nn.softmax(x, axis=1) if with_logits else x
    y = jax.nn.one_hot(target, c, dtype=jnp.float32)
    if mask is not None:
        m = mask.astype(jnp.float32).reshape(n, 1)
        p = p * m
        y = y * m
    p = ((1.0 - p) ** alpha) * p
    inter = p * y
    loss_rc = 1.0 - (2.0 * inter + smooth) / (
        p.sum(axis=0, keepdims=True) + y.sum(axis=0, keepdims=True) + smooth)
    return loss_rc.sum(axis=1).mean()


if __name__ == "__main__":
    key = jax.random.PRNGKey(0)
    k1, k2, k3, k4, k5, k6 = jax.random.split(key, 6)

    # Cases 1/2: small-C NER-like shape -> lane-dense (C, N) kernel path.
    N1, C1 = 200, 8            # deliberately NOT a multiple of 128 (padding)
    logits1 = jax.random.normal(k1, (N1, C1), dtype=jnp.float32)
    target1 = jax.random.randint(k2, (N1,), 0, C1, dtype=jnp.int32)
    mask1 = (jax.random.uniform(k3, (N1,)) > 0.2).astype(jnp.float32)

    out1 = dice_loss(logits1, target1)                       # defaults
    ref1 = _dice_loss_ref(logits1, target1)
    out2 = dice_loss(logits1, target1, mask1, alpha=1.0)     # mask + alpha
    ref2 = _dice_loss_ref(logits1, target1, mask1, alpha=1.0)

    # Case 3: force a (2 parallel splits) x (3 N-tiles) grid to exercise the
    # accumulator reset/carry and the per-split partial combine (still small).
    N3, C3 = 600, 8
    logits3 = jax.random.normal(k4, (N3, C3), dtype=jnp.float32)
    target3 = jax.random.randint(k5, (N3,), 0, C3, dtype=jnp.int32)
    mask3 = (jax.random.uniform(k6, (N3,)) > 0.3).astype(jnp.float32)
    out3 = dice_loss(logits3, target3, mask3,
                     chunk_override=128, max_tile_override=128)
    ref3 = _dice_loss_ref(logits3, target3, mask3)

    # Case 4: C >= 64 -> natural (N, C) layout path (no wrapper transpose),
    # bf16 input exercises the dtype-aware tiling + in-kernel upcast.
    N4, C4 = 96, 128
    logits4 = jax.random.normal(k1, (N4, C4), dtype=jnp.bfloat16)
    target4 = jax.random.randint(k2, (N4,), 0, C4, dtype=jnp.int32)
    out4 = dice_loss(logits4, target4)
    ref4 = _dice_loss_ref(logits4, target4)

    # Case 5: reduction='sum'.
    out5 = dice_loss(logits1, target1, reduction="sum")
    ref5 = ref1 * N1

    jax.block_until_ready((out1, out2, out3, out4, out5))
    assert jnp.allclose(out1, ref1, rtol=2e-5, atol=1e-5), (out1, ref1)
    assert jnp.allclose(out2, ref2, rtol=2e-5, atol=1e-5), (out2, ref2)
    assert jnp.allclose(out3, ref3, rtol=2e-5, atol=1e-5), (out3, ref3)
    assert jnp.allclose(out4, ref4, rtol=2e-5, atol=1e-5), (out4, ref4)
    assert jnp.allclose(out5, ref5, rtol=2e-5, atol=1e-4), (out5, ref5)

    print("KERNEL_OK")
</pallas_src>

<mosaic_0001>
module attributes {stable_mosaic.version = 11 : i64} {
  func.func @_dice_kernel_cs(%arg0: i32, %arg1: i32, %arg2: memref<8x512xf32, #tpu.memory_space<vmem>>, %arg3: memref<1x512xi32, #tpu.memory_space<vmem>>, %arg4: memref<1x512xf32, #tpu.memory_space<vmem>>, %arg5: memref<1x8x1xf32, #tpu.memory_space<vmem>>, %arg6: memref<1x8x1xf32, #tpu.memory_space<vmem>>, %arg7: memref<1x8x1xf32, #tpu.memory_space<vmem>>, %arg8: memref<8x128xf32, #tpu.memory_space<vmem>>, %arg9: memref<8x128xf32, #tpu.memory_space<vmem>>, %arg10: memref<8x128xf32, #tpu.memory_space<vmem>>) attributes {dimension_semantics = [#tpu.dimension_semantics<parallel>, #tpu.dimension_semantics<arbitrary>], iteration_bounds = array<i64: 1, 1>, scalar_prefetch = 0 : i64, scratch_operands = 3 : i64, tpu.core_type = #tpu.core_type<tc>, window_params = [{transform_indices = @transform_0, window_bounds = array<i64: 8, 512>}, {transform_indices = @transform_1, window_bounds = array<i64: 1, 512>}, {transform_indices = @transform_2, window_bounds = array<i64: 1, 512>}, {transform_indices = @transform_3, window_bounds = array<i64: 1, 8, 1>}, {transform_indices = @transform_4, window_bounds = array<i64: 1, 8, 1>}, {transform_indices = @transform_5, window_bounds = array<i64: 1, 8, 1>}]} {
    %c0_i32 = arith.constant 0 : i32
    %0 = arith.cmpi eq, %arg1, %c0_i32 : i32
    %1 = arith.extui %0 : i1 to i32
    %c0_i32_0 = arith.constant 0 : i32
    %2 = arith.cmpi ne, %1, %c0_i32_0 : i32
    scf.if %2 {
      %cst_21 = arith.constant 0.000000e+00 : f32
      %65 = vector.broadcast %cst_21 : f32 to vector<8x128xf32>
      %c0_22 = arith.constant 0 : index
      %c0_23 = arith.constant 0 : index
      %66 = vector.load %arg8[%c0_22, %c0_23] : memref<8x128xf32, #tpu.memory_space<vmem>>, vector<8x128xf32>
      tpu.vector_store %arg8[%c0_22, %c0_23], %65 {strides = array<i32>} : memref<8x128xf32, #tpu.memory_space<vmem>>, vector<8x128xf32>,
      %cst_24 = arith.constant 0.000000e+00 : f32
      %67 = vector.broadcast %cst_24 : f32 to vector<8x128xf32>
      %c0_25 = arith.constant 0 : index
      %c0_26 = arith.constant 0 : index
      %68 = vector.load %arg9[%c0_25, %c0_26] : memref<8x128xf32, #tpu.memory_space<vmem>>, vector<8x128xf32>
      tpu.vector_store %arg9[%c0_25, %c0_26], %67 {strides = array<i32>} : memref<8x128xf32, #tpu.memory_space<vmem>>, vector<8x128xf32>,
      %cst_27 = arith.constant 0.000000e+00 : f32
      %69 = vector.broadcast %cst_27 : f32 to vector<8x128xf32>
      %c0_28 = arith.constant 0 : index
      %c0_29 = arith.constant 0 : index
      %70 = vector.load %arg10[%c0_28, %c0_29] : memref<8x128xf32, #tpu.memory_space<vmem>>, vector<8x128xf32>
      tpu.vector_store %arg10[%c0_28, %c0_29], %69 {strides = array<i32>} : memref<8x128xf32, #tpu.memory_space<vmem>>, vector<8x128xf32>,
    } else {
    }
    %c0_i32_1 = arith.constant 0 : i32
    %c512_i32 = arith.constant 512 : i32
    %3 = arith.muli %c0_i32_1, %c512_i32 : i32
    %4 = tpu.assume_multiple %3, 512 : i32
    %c0 = arith.constant 0 : index
    %5 = arith.index_cast %4 : i32 to index
    %6 = vector.load %arg2[%c0, %5] : memref<8x512xf32, #tpu.memory_space<vmem>>, vector<8x512xf32>
    %cst = arith.constant dense<0xFF800000> : vector<512xf32>
    %7 = vector.multi_reduction <maximumf>, %6, %cst [0] : vector<8x512xf32> to vector<512xf32>
    %8 = vector.shape_cast %7 : vector<512xf32> to vector<1x512xf32>
    %9 = vector.broadcast %8 : vector<1x512xf32> to vector<8x512xf32>
    %10 = arith.subf %6, %9 : vector<8x512xf32>
    %11 = math.exp %10 : vector<8x512xf32>
    %cst_2 = arith.constant dense<0.000000e+00> : vector<512xf32>
    %12 = vector.multi_reduction <add>, %11, %cst_2 [0] : vector<8x512xf32> to vector<512xf32>
    %13 = vector.shape_cast %12 : vector<512xf32> to vector<1x512xf32>
    %cst_3 = arith.constant 1.000000e+00 : f32
    %14 = vector.broadcast %cst_3 : f32 to vector<1x512xf32>
    %15 = arith.divf %14, %13 : vector<1x512xf32>
    %16 = vector.broadcast %15 : vector<1x512xf32> to vector<8x512xf32>
    %17 = arith.mulf %11, %16 : vector<8x512xf32>
    %c0_4 = arith.constant 0 : index
    %18 = arith.index_cast %4 : i32 to index
    %19 = vector.load %arg4[%c0_4, %18] : memref<1x512xf32, #tpu.memory_space<vmem>>, vector<1x512xf32>
    %c0_5 = arith.constant 0 : index
    %20 = arith.index_cast %4 : i32 to index
    %21 = vector.load %arg3[%c0_5, %20] : memref<1x512xi32, #tpu.memory_space<vmem>>, vector<1x512xi32>
    %22 = tpu.iota {dimensions = array<i32: 0>} : vector<8x512xi32>
    %23 = vector.broadcast %21 : vector<1x512xi32> to vector<8x512xi32>
    %24 = arith.cmpi eq, %22, %23 : vector<8x512xi32>
    %cst_6 = arith.constant 0.000000e+00 : f32
    %25 = vector.shape_cast %19 : vector<1x512xf32> to vector<1x512xf32>
    %26 = vector.broadcast %25 : vector<1x512xf32> to vector<8x512xf32>
    %27 = vector.broadcast %cst_6 : f32 to vector<8x512xf32>
    %28 = arith.select %24, %26, %27 : vector<8x512xi1>, vector<8x512xf32>
    %29 = vector.broadcast %19 : vector<1x512xf32> to vector<8x512xf32>
    %30 = arith.mulf %17, %29 : vector<8x512xf32>
    %c0_7 = arith.constant 0 : index
    %c0_8 = arith.constant 0 : index
    %31 = vector.load %arg8[%c0_7, %c0_8] : memref<8x128xf32, #tpu.memory_space<vmem>>, vector<8x128xf32>
    %32 = vector.extract_strided_slice %30 {offsets = [0, 0], sizes = [8, 128], strides = [1, 1]} : vector<8x512xf32> to vector<8x128xf32>
    %33 = vector.extract_strided_slice %30 {offsets = [0, 128], sizes = [8, 128], strides = [1, 1]} : vector<8x512xf32> to vector<8x128xf32>
    %34 = arith.addf %32, %33 : vector<8x128xf32>
    %35 = vector.extract_strided_slice %30 {offsets = [0, 256], sizes = [8, 128], strides = [1, 1]} : vector<8x512xf32> to vector<8x128xf32>
    %36 = arith.addf %34, %35 : vector<8x128xf32>
    %37 = vector.extract_strided_slice %30 {offsets = [0, 384], sizes = [8, 128], strides = [1, 1]} : vector<8x512xf32> to vector<8x128xf32>
    %38 = arith.addf %36, %37 : vector<8x128xf32>
    %39 = arith.addf %31, %38 : vector<8x128xf32>
    %c0_9 = arith.constant 0 : index
    %c0_10 = arith.constant 0 : index
    %40 = vector.load %arg8[%c0_9, %c0_10] : memref<8x128xf32, #tpu.memory_space<vmem>>, vector<8x128xf32>
    tpu.vector_store %arg8[%c0_9, %c0_10], %39 {strides = array<i32>} : memref<8x128xf32, #tpu.memory_space<vmem>>, vector<8x128xf32>,
    %c0_11 = arith.constant 0 : index
    %c0_12 = arith.constant 0 : index
    %41 = vector.load %arg9[%c0_11, %c0_12] : memref<8x128xf32, #tpu.memory_space<vmem>>, vector<8x128xf32>
    %42 = vector.extract_strided_slice %28 {offsets = [0, 0], sizes = [8, 128], strides = [1, 1]} : vector<8x512xf32> to vector<8x128xf32>
    %43 = vector.extract_strided_slice %28 {offsets = [0, 128], sizes = [8, 128], strides = [1, 1]} : vector<8x512xf32> to vector<8x128xf32>
    %44 = arith.addf %42, %43 : vector<8x128xf32>
    %45 = vector.extract_strided_slice %28 {offsets = [0, 256], sizes = [8, 128], strides = [1, 1]} : vector<8x512xf32> to vector<8x128xf32>
    %46 = arith.addf %44, %45 : vector<8x128xf32>
    %47 = vector.extract_strided_slice %28 {offsets = [0, 384], sizes = [8, 128], strides = [1, 1]} : vector<8x512xf32> to vector<8x128xf32>
    %48 = arith.addf %46, %47 : vector<8x128xf32>
    %49 = arith.addf %41, %48 : vector<8x128xf32>
    %c0_13 = arith.constant 0 : index
    %c0_14 = arith.constant 0 : index
    %50 = vector.load %arg9[%c0_13, %c0_14] : memref<8x128xf32, #tpu.memory_space<vmem>>, vector<8x128xf32>
    tpu.vector_store %arg9[%c0_13, %c0_14], %49 {strides = array<i32>} : memref<8x128xf32, #tpu.memory_space<vmem>>, vector<8x128xf32>,
    %c0_15 = arith.constant 0 : index
    %c0_16 = arith.constant 0 : index
    %51 = vector.load %arg10[%c0_15, %c0_16] : memref<8x128xf32, #tpu.memory_space<vmem>>, vector<8x128xf32>
    %52 = arith.mulf %30, %28 : vector<8x512xf32>
    %53 = vector.extract_strided_slice %52 {offsets = [0, 0], sizes = [8, 128], strides = [1, 1]} : vector<8x512xf32> to vector<8x128xf32>
    %54 = vector.extract_strided_slice %52 {offsets = [0, 128], sizes = [8, 128], strides = [1, 1]} : vector<8x512xf32> to vector<8x128xf32>
    %55 = arith.addf %53, %54 : vector<8x128xf32>
    %56 = vector.extract_strided_slice %52 {offsets = [0, 256], sizes = [8, 128], strides = [1, 1]} : vector<8x512xf32> to vector<8x128xf32>
    %57 = arith.addf %55, %56 : vector<8x128xf32>
    %58 = vector.extract_strided_slice %52 {offsets = [0, 384], sizes = [8, 128], strides = [1, 1]} : vector<8x512xf32> to vector<8x128xf32>
    %59 = arith.addf %57, %58 : vector<8x128xf32>
    %60 = arith.addf %51, %59 : vector<8x128xf32>
    %c0_17 = arith.constant 0 : index
    %c0_18 = arith.constant 0 : index
    %61 = vector.load %arg10[%c0_17, %c0_18] : memref<8x128xf32, #tpu.memory_space<vmem>>, vector<8x128xf32>
    tpu.vector_store %arg10[%c0_17, %c0_18], %60 {strides = array<i32>} : memref<8x128xf32, #tpu.memory_space<vmem>>, vector<8x128xf32>,
    %c1_i32 = arith.constant 1 : i32
    %c0_i32_19 = arith.constant 0 : i32
    %62 = arith.cmpi eq, %arg1, %c0_i32_19 : i32
    %63 = arith.extui %62 : i1 to i32
    %c0_i32_20 = arith.constant 0 : i32
    %64 = arith.cmpi ne, %63, %c0_i32_20 : i32
    scf.if %64 {
      %c0_21 = arith.constant 0 : index
      %c0_22 = arith.constant 0 : index
      %65 = vector.load %arg8[%c0_21, %c0_22] : memref<8x128xf32, #tpu.memory_space<vmem>>, vector<8x128xf32>
      %cst_23 = arith.constant dense<0.000000e+00> : vector<8xf32>
      %66 = vector.multi_reduction <add>, %65, %cst_23 [1] : vector<8x128xf32> to vector<8xf32>
      %67 = vector.shape_cast %66 : vector<8xf32> to vector<8x1xf32>
      %68 = vector.shape_cast %67 : vector<8x1xf32> to vector<1x8x1xf32>
      %c0_24 = arith.constant 0 : index
      %c0_25 = arith.constant 0 : index
      %c0_26 = arith.constant 0 : index
      %69 = vector.load %arg5[%c0_24, %c0_25, %c0_26] : memref<1x8x1xf32, #tpu.memory_space<vmem>>, vector<1x8x1xf32>
      tpu.vector_store %arg5[%c0_24, %c0_25, %c0_26], %68 {strides = array<i32>} : memref<1x8x1xf32, #tpu.memory_space<vmem>>, vector<1x8x1xf32>,
      %c0_27 = arith.constant 0 : index
      %c0_28 = arith.constant 0 : index
      %70 = vector.load %arg9[%c0_27, %c0_28] : memref<8x128xf32, #tpu.memory_space<vmem>>, vector<8x128xf32>
      %cst_29 = arith.constant dense<0.000000e+00> : vector<8xf32>
      %71 = vector.multi_reduction <add>, %70, %cst_29 [1] : vector<8x128xf32> to vector<8xf32>
      %72 = vector.shape_cast %71 : vector<8xf32> to vector<8x1xf32>
      %73 = vector.shape_cast %72 : vector<8x1xf32> to vector<1x8x1xf32>
      %c0_30 = arith.constant 0 : index
      %c0_31 = arith.constant 0 : index
      %c0_32 = arith.constant 0 : index
      %74 = vector.load %arg6[%c0_30, %c0_31, %c0_32] : memref<1x8x1xf32, #tpu.memory_space<vmem>>, vector<1x8x1xf32>
      tpu.vector_store %arg6[%c0_30, %c0_31, %c0_32], %73 {strides = array<i32>} : memref<1x8x1xf32, #tpu.memory_space<vmem>>, vector<1x8x1xf32>,
      %c0_33 = arith.constant 0 : index
      %c0_34 = arith.constant 0 : index
      %75 = vector.load %arg10[%c0_33, %c0_34] : memref<8x128xf32, #tpu.memory_space<vmem>>, vector<8x128xf32>
      %cst_35 = arith.constant dense<0.000000e+00> : vector<8xf32>
      %76 = vector.multi_reduction <add>, %75, %cst_35 [1] : vector<8x128xf32> to vector<8xf32>
      %77 = vector.shape_cast %76 : vector<8xf32> to vector<8x1xf32>
      %78 = vector.shape_cast %77 : vector<8x1xf32> to vector<1x8x1xf32>
      %c0_36 = arith.constant 0 : index
      %c0_37 = arith.constant 0 : index
      %c0_38 = arith.constant 0 : index
      %79 = vector.load %arg7[%c0_36, %c0_37, %c0_38] : memref<1x8x1xf32, #tpu.memory_space<vmem>>, vector<1x8x1xf32>
      tpu.vector_store %arg7[%c0_36, %c0_37, %c0_38], %78 {strides = array<i32>} : memref<1x8x1xf32, #tpu.memory_space<vmem>>, vector<1x8x1xf32>,
    } else {
    }
    return
  }
  func.func @transform_0(%arg0: i32, %arg1: i32) -> (i32, i32) {
    %c1_i32 = arith.constant 1 : i32
    %0 = arith.muli %arg0, %c1_i32 : i32
    %1 = arith.addi %0, %arg1 : i32
    %c0_i32 = arith.constant 0 : i32
    %c0_i32_0 = arith.constant 0 : i32
    return %c0_i32, %1 : i32, i32
  }
  func.func @transform_1(%arg0: i32, %arg1: i32) -> (i32, i32) {
    %c1_i32 = arith.constant 1 : i32
    %0 = arith.muli %arg0, %c1_i32 : i32
    %1 = arith.addi %0, %arg1 : i32
    %c0_i32 = arith.constant 0 : i32
    %c0_i32_0 = arith.constant 0 : i32
    return %c0_i32, %1 : i32, i32
  }
  func.func @transform_2(%arg0: i32, %arg1: i32) -> (i32, i32) {
    %c1_i32 = arith.constant 1 : i32
    %0 = arith.muli %arg0, %c1_i32 : i32
    %1 = arith.addi %0, %arg1 : i32
    %c0_i32 = arith.constant 0 : i32
    %c0_i32_0 = arith.constant 0 : i32
    return %c0_i32, %1 : i32, i32
  }
  func.func @transform_3(%arg0: i32, %arg1: i32) -> (i32, i32, i32) {
    %c0_i32 = arith.constant 0 : i32
    %c0_i32_0 = arith.constant 0 : i32
    %c0_i32_1 = arith.constant 0 : i32
    return %arg0, %c0_i32, %c0_i32_0 : i32, i32, i32
  }
  func.func @transform_4(%arg0: i32, %arg1: i32) -> (i32, i32, i32) {
    %c0_i32 = arith.constant 0 : i32
    %c0_i32_0 = arith.constant 0 : i32
    %c0_i32_1 = arith.constant 0 : i32
    return %arg0, %c0_i32, %c0_i32_0 : i32, i32, i32
  }
  func.func @transform_5(%arg0: i32, %arg1: i32) -> (i32, i32, i32) {
    %c0_i32 = arith.constant 0 : i32
    %c0_i32_0 = arith.constant 0 : i32
    %c0_i32_1 = arith.constant 0 : i32
    return %arg0, %c0_i32, %c0_i32_0 : i32, i32, i32
  }
}

</mosaic_0001>

<bundles_post_ra>
// kernel: tpu_custom_call.1
= control target key start
LH: loop header
LB: loop body
LE: loop exit
PB: predicated region body
PF: predicated region fallthrough
CT: control target
= control target key end

     0   :  { %11 = vsyncpa [#allocation6], 0  ;;  %s392_s0 = inlined_call_operand.hbm [shape: f32[8,512], index: 0, kind: input, shape index: {}]   ;;  %s393_s1 = inlined_call_operand.hbm [shape: s32[1,512], index: 1, kind: input, shape index: {}]   ;;  %s394_s2 = inlined_call_operand.hbm [shape: f32[1,512], index: 2, kind: input, shape index: {}]   ;;  %s395_s3 = inlined_call_operand.vmem [shape: f32[1,8,1], index: 3, kind: output, shape index: {0}]   ;;  %s396_s4 = inlined_call_operand.vmem [shape: f32[1,8,1], index: 4, kind: output, shape index: {1}]   ;;  %s397_s5 = inlined_call_operand.vmem [shape: f32[1,8,1], index: 5, kind: output, shape index: {2}]  }
   0x1   :  { %12 = vsyncpa [#allocation8], 0  ;;  %s341_s18 = smov [#allocation7]   ;;  %s342_s20 = smov [#allocation5]  }
   0x2   :  { %s37_s19 = sshll.u32 %s341_s18, 4  ;;  %s23_s21 = sshll.u32 %s342_s20, 4  ;;  %s38_s19 = int_to_ptr.vmem [resolvable:$true] %s37_s19  ;;  %s24_s21 = int_to_ptr.vmem [resolvable:$true] %s23_s21 }
   0x3   :  { %s285_s22 = scalar_lea.vmem %s38_s19, 64  ;;  %p290_p1 = scmp.lt.s32.totalorder %s38_s19, %s38_s19 }
   0x4   :  { %p286_p0 = scmp.ne.s32.totalorder %s38_s19, %s285_s22  ;;  %p291_p2 = scmp.lt.s32.totalorder %s285_s22, %s285_s22 }
   0x6   :  { %p292_p3 = por %p291_p2, %p290_p1 }
   0x8   :  { %p293_p4 = pnand %p292_p3, %p286_p0 }
   0xa   :  { %296 = shalt.err (!%p293_p4)
}
   0xb   :  { %40 = dma.hbm_to_vmem [thread:$0]  %s393_s1, 64, %s38_s19, [#allocation8]  }
   0xc   :  { %s305_s25 = scalar_lea.vmem %s24_s21, 512  ;;  %p310_p6 = scmp.lt.s32.totalorder %s24_s21, %s24_s21 }
   0xd   :  { %p306_p5 = scmp.ne.s32.totalorder %s24_s21, %s305_s25  ;;  %p311_p7 = scmp.lt.s32.totalorder %s305_s25, %s305_s25 }
   0xf   :  { %p312_p8 = por %p311_p7, %p310_p6 }
  0x11   :  { %p313_p9 = pnand %p312_p8, %p306_p5 }
  0x13   :  { %316 = shalt.err (!%p313_p9)
}
  0x14   :  { %26 = dma.hbm_to_vmem [thread:$0]  %s392_s0, 512, %s24_s21, [#allocation6]  }
  0x15   :  { %s343_s28 = smov [#allocation9]  }
  0x16   :  { %s51_s29 = sshll.u32 %s343_s28, 4  ;;  %s52_s29 = int_to_ptr.vmem [resolvable:$true] %s51_s29 }
  0x17   :  { %s325_s30 = scalar_lea.vmem %s52_s29, 64  ;;  %p330_p11 = scmp.lt.s32.totalorder %s52_s29, %s52_s29 }
  0x18   :  { %p326_p10 = scmp.ne.s32.totalorder %s52_s29, %s325_s30  ;;  %p331_p12 = scmp.lt.s32.totalorder %s325_s30, %s325_s30 }
  0x1a   :  { %p332_p13 = por %p331_p12, %p330_p11 }
  0x1c   :  { %p333_p0 = pnand %p332_p13, %p326_p10 }
  0x1e   :  { %336 = shalt.err (!%p333_p0)
}
  0x1f   :  { %54 = dma.hbm_to_vmem [thread:$0]  %s394_s2, 64, %s52_s29, [#allocation8]  }
  0x20   :  { %337 = dma.done.wait [#allocation6], 512  }
  0x21   :  { %338 = vsyncadd [#allocation6], 4294966784 }
  0x22   :  { %339 = dma.done.wait [#allocation8], 128  }
  0x23   :  { %340 = vsyncadd [#allocation8], 4294967168  ;;  %v77_v0 = vld [vmem:[#allocation5] sm:$0xff]  ;;  %v78_v1 = vld [vmem:[#allocation5 + $0x8] sm:$0xff]  ;;  %v155_v60 = vlaneseq  ;;  %vm234_vm4 = vcmask 7168  }
  0x24   :  { %v79_v2 = vld [vmem:[#allocation5 + $0x10] sm:$0xff]  ;;  %v80_v3 = vld [vmem:[#allocation5 + $0x18] sm:$0xff]  ;;  %v81_v4 = vrot.slane %v77_v0, 4  ;;  %v87_v5 = vrot.slane %v78_v1, 4 }
  0x25   :  { %v93_v6 = vrot.slane %v79_v2, 4  ;;  %v99_v7 = vrot.slane %v80_v3, 4 }
  0x26   :  { %v82_v8 = vmax.f32 %v77_v0, %v81_v4  ;;  %v88_v9 = vmax.f32 %v78_v1, %v87_v5 }
  0x27   :  { %v94_v10 = vmax.f32 %v79_v2, %v93_v6  ;;  %v100_v11 = vmax.f32 %v80_v3, %v99_v7  ;;  %v153_v7 = vld [vmem:[#allocation9] sm:$0xf] }
  0x28   :  { %v83_v12 = vrot.slane %v82_v8, 2  ;;  %v89_v13 = vrot.slane %v88_v9, 2 }
  0x29   :  { %v95_v14 = vrot.slane %v94_v10, 2  ;;  %v101_v15 = vrot.slane %v100_v11, 2 }
  0x2a   :  { %v84_v16 = vmax.f32 %v82_v8, %v83_v12  ;;  %v90_v17 = vmax.f32 %v88_v9, %v89_v13 }
  0x2b   :  { %v96_v18 = vmax.f32 %v94_v10, %v95_v14  ;;  %v102_v19 = vmax.f32 %v100_v11, %v101_v15 }
  0x2c   :  { %v85_v20 = vrot.slane %v84_v16, 1  ;;  %v91_v21 = vrot.slane %v90_v17, 1 }
  0x2d   :  { %v97_v22 = vrot.slane %v96_v18, 1  ;;  %v103_v23 = vrot.slane %v102_v19, 1 }
  0x2e   :  { %v86_v24 = vmax.f32 %v84_v16, %v85_v20  ;;  %v92_v25 = vmax.f32 %v90_v17, %v91_v21 }
  0x2f   :  { %v98_v26 = vmax.f32 %v96_v18, %v97_v22  ;;  %v104_v27 = vmax.f32 %v102_v19, %v103_v23 }
  0x30   :  { %v105_v28 = vsub.f32 %v77_v0, %v86_v24  ;;  %v106_v29 = vsub.f32 %v78_v1, %v92_v25  ;;  %v156_v1 = vshrl.u32 %v155_v60, 7 }
  0x31   :  { %v107_v30 = vsub.f32 %v79_v2, %v98_v26  ;;  %v108_v31 = vsub.f32 %v80_v3, %v104_v27  ;;  %v154_v2 = vld [vmem:[#allocation7] sm:$0xf] }
  0x32   :  { %v109_v32 = vmul.f32 1.442695, %v105_v28  ;;  %v111_v33 = vmul.f32 1.442695, %v106_v29  ;;  %v159_v3 = vsub.s32 0, %v156_v1  ;;  %v163_v4 = vsub.s32 1, %v156_v1 }
  0x33   :  { %v113_v34 = vmul.f32 1.442695, %v107_v30  ;;  %v115_v35 = vmul.f32 1.442695, %v108_v31  ;;  %v167_v5 = vsub.s32 2, %v156_v1  ;;  %v171_v8 = vsub.s32 3, %v156_v1 }
  0x34   :  { %261 = vpow2.f32 %v109_v32  ;;  %v160_v6 = vrot.slane %v154_v2, %v159_v3  ;;  %v164_v9 = vrot.slane %v154_v2, %v163_v4  ;;  %v181_v12 = vrot.slane %v153_v7, %v159_v3 }
  0x35   :  { %263 = vpow2.f32 %v111_v33  ;;  %v168_v10 = vrot.slane %v154_v2, %v167_v5  ;;  %v172_v11 = vrot.slane %v154_v2, %v171_v8  ;;  %v185_v14 = vrot.slane %v153_v7, %v163_v4 }
  0x36   :  { %265 = vpow2.f32 %v113_v34  ;;  %vm173_vm0 = vcmp.eq.s32.totalorder %v156_v1, %v160_v6  ;;  %vm174_vm1 = vcmp.eq.s32.totalorder %v156_v1, %v164_v9  ;;  %v189_v17 = vrot.slane %v153_v7, %v167_v5 }
  0x37   :  { %267 = vpow2.f32 %v115_v35  ;;  %vm175_vm2 = vcmp.eq.s32.totalorder %v156_v1, %v168_v10  ;;  %v193_v20 = vrot.slane %v153_v7, %v171_v8  ;;  %vm176_vm3 = vcmp.eq.s32.totalorder %v156_v1, %v172_v11 }
  0x38   :  { %v198_v21 = vsel %vm173_vm0, %v181_v12, 0.0  ;;  %v199_v25 = vsel %vm174_vm1, %v185_v14, 0.0  ;;  %v200_v28 = vsel %vm175_vm2, %v189_v17, 0.0 }
  0x39   :  { %v213_v29 = vadd.f32 %v199_v25, %v198_v21  ;;  %v201_v31 = vsel %vm176_vm3, %v193_v20, 0.0 }
  0x41   :  { %v262_v36 = vpop.eup %261 }
  0x42   :  { %v264_v37 = vpop.eup %263  ;;  %v117_v38 = vrot.slane %v262_v36, 4 }
  0x43   :  { %v266_v39 = vpop.eup %265  ;;  %v123_v40 = vrot.slane %v264_v37, 4 }
  0x44   :  { %v268_v41 = vpop.eup %267  ;;  %v118_v42 = vadd.f32 %v262_v36, %v117_v38  ;;  %v129_v43 = vrot.slane %v266_v39, 4 }
  0x45   :  { %v124_v44 = vadd.f32 %v264_v37, %v123_v40  ;;  %v135_v45 = vrot.slane %v268_v41, 4 }
  0x46   :  { %v119_v46 = vrot.slane %v118_v42, 2  ;;  %v130_v47 = vadd.f32 %v266_v39, %v129_v43 }
  0x47   :  { %v125_v48 = vrot.slane %v124_v44, 2  ;;  %v136_v49 = vadd.f32 %v268_v41, %v135_v45 }
  0x48   :  { %v120_v50 = vadd.f32 %v119_v46, %v118_v42  ;;  %v131_v51 = vrot.slane %v130_v47, 2  ;;  %v214_v42 = vadd.f32 %v213_v29, %v200_v28 }
  0x49   :  { %v126_v52 = vadd.f32 %v125_v48, %v124_v44  ;;  %v137_v53 = vrot.slane %v136_v49, 2 }
  0x4a   :  { %v121_v54 = vrot.slane %v120_v50, 1  ;;  %v132_v55 = vadd.f32 %v131_v51, %v130_v47  ;;  %v215_v45 = vadd.f32 %v214_v42, %v201_v31 }
  0x4b   :  { %v127_v56 = vrot.slane %v126_v52, 1  ;;  %v138_v57 = vadd.f32 %v137_v53, %v136_v49 }
  0x4c   :  { %v122_v58 = vadd.f32 %v121_v54, %v120_v50  ;;  %v133_v59 = vrot.slane %v132_v55, 1 }
  0x4d   :  { %v128_v61 = vadd.f32 %v127_v56, %v126_v52  ;;  %v139_v62 = vrot.slane %v138_v57, 1 }
  0x4e   :  { %v134_v63 = vadd.f32 %v133_v59, %v132_v55  ;;  %269 = vrcp.f32 %v122_v58 }
  0x4f   :  { %v140_v0 = vadd.f32 %v139_v62, %v138_v57  ;;  %271 = vrcp.f32 %v128_v61 }
  0x50   :  { %273 = vrcp.f32 %v134_v63 }
  0x51   :  { %275 = vrcp.f32 %v140_v0 }
  0x5b   :  { %v270_v13 = vpop.eup %269 }
  0x5c   :  { %v272_v15 = vpop.eup %271  ;;  %v149_v16 = vmul.f32 %v270_v13, %v262_v36 }
  0x5d   :  { %v274_v18 = vpop.eup %273  ;;  %v150_v19 = vmul.f32 %v272_v15, %v264_v37 }
  0x5e   :  { %v276_v22 = vpop.eup %275  ;;  %v151_v23 = vmul.f32 %v274_v18, %v266_v39  ;;  %v202_v24 = vmul.f32 %v181_v12, %v149_v16 }
  0x5f   :  { %v152_v26 = vmul.f32 %v276_v22, %v268_v41  ;;  %v203_v27 = vmul.f32 %v185_v14, %v150_v19 }
  0x60   :  { %v204_v30 = vmul.f32 %v189_v17, %v151_v23  ;;  %v219_v32 = vmul.f32 %v202_v24, %v198_v21 }
  0x61   :  { %v205_v33 = vmul.f32 %v193_v20, %v152_v26  ;;  %v207_v34 = vadd.f32 %v203_v27, %v202_v24  ;;  %v220_v35 = vmul.f32 %v203_v27, %v199_v25 }
  0x62   :  { %v221_v36 = vmul.f32 %v204_v30, %v200_v28 }
  0x63   :  { %v208_v38 = vadd.f32 %v207_v34, %v204_v30  ;;  %v222_v37 = vmul.f32 %v205_v33, %v201_v31  ;;  %v223_v40 = vadd.f32 %v220_v35, %v219_v32 }
  0x65   :  { %v209_v43 = vadd.f32 %v208_v38, %v205_v33  ;;  %v224_v44 = vadd.f32 %v223_v40, %v221_v36 }
  0x67   :  { %232 = vadd.xlane.f32.xlu0 %v209_v43  ;;  %v225_v39 = vadd.f32 %v224_v44, %v222_v37 }
  0x69   :  { %241 = vadd.xlane.f32.xlu1 %v225_v39 }
  0x6b   :  { %237 = vadd.xlane.f32.xlu0 %v215_v45 }
  0xf0   :  { %v233_v41 = vpop.xlane.xlu0 %232 }
  0xf1   :  { %235 = vst.msk [vmem:[%s395_s3] sm:$0xff] %vm234_vm4, %v233_v41 }
  0xf2   :  { %v242_v46 = vpop.xlane.xlu1 %241 }
  0xf3   :  { %243 = vst.msk [vmem:[%s397_s5] sm:$0xff] %vm234_vm4, %v242_v46 }
  0xf4   :  { %v238_v47 = vpop.xlane.xlu0 %237 }
  0xf5   :  { %239 = vst.msk [vmem:[%s396_s4] sm:$0xff] %vm234_vm4, %v238_v47 }
  0xf6   :  { %256 = vsyncpa [#allocation6], 1 }
  0xf7   :  { %257 = vsyncpa [#allocation8], 1 }

</bundles_post_ra>
